<compile_context>
chip_gen: v5e
topology: v5e:2x2
jax: 0.10.0
libtpu: 0.0.40
codegen_flags: <defaults>
</compile_context>

<pallas_src>
import functools

import jax
import jax.numpy as jnp
from jax.experimental import pallas as pl
from jax.experimental.pallas import tpu as pltpu


def _round_up(n, m):
    return ((n + m - 1) // m) * m


def _fused_kernel(x_ref, eg_ref, eb_ref, w_ref, b_ref, g_ref, beta_ref, o_ref,
                  *, emb_eps, ln_eps):
    """One row tile per grid step.

    x_ref   : (R, indim)  bf16  summed (word + pos + type) embeddings
    eg_ref  : (1, indim)  f32   embedding LayerNorm gamma
    eb_ref  : (1, indim)  f32   embedding LayerNorm beta
    w_ref   : (indim, outdim) bf16  conv1d (kernel_size=1) weight
    b_ref   : (1, outdim) f32   conv1d bias
    g_ref   : (1, outdim) f32   q_layer_norm gamma
    beta_ref: (1, outdim) f32   q_layer_norm beta
    o_ref   : (R, outdim) f32
    """
    x = x_ref[...].astype(jnp.float32)                      # (R, indim)

    # --- RoBERTa embedding LayerNorm (eps = 1e-5, biased variance) ---
    mu = jnp.mean(x, axis=-1, keepdims=True)
    var = jnp.maximum(jnp.mean(x * x, axis=-1, keepdims=True) - mu * mu, 0.0)
    x = (x - mu) * jax.lax.rsqrt(var + emb_eps)
    x = x * eg_ref[...] + eb_ref[...]

    # --- Conv1D with kernel_size=1  ==  pointwise linear; MXU in bf16 ---
    y = jnp.dot(x.astype(jnp.bfloat16), w_ref[...],
                preferred_element_type=jnp.float32)
    y = y + b_ref[...]                                      # (R, outdim)

    # --- q_layer_norm (eps = 1e-6) ---
    mu2 = jnp.mean(y, axis=-1, keepdims=True)
    var2 = jnp.maximum(jnp.mean(y * y, axis=-1, keepdims=True) - mu2 * mu2, 0.0)
    y = (y - mu2) * jax.lax.rsqrt(var2 + ln_eps)
    o_ref[...] = (y * g_ref[...] + beta_ref[...]).astype(o_ref.dtype)


def roberta_embedding_forward(bert_ids, tmask, params, *, row_tile=256):
    """Forward: embedding gather (glue, plain JAX) + fused Pallas kernel."""
    del tmask  # TODO(synk): only consumed by the (not replicated) encoder attention.

    B, S = bert_ids.shape
    word_emb = params["word_emb"]          # (vocab, indim)
    indim = word_emb.shape[1]
    outdim = params["conv_w"].shape[1]

    # Glue: embedding lookups / sums (gather has no rectangular-tile form here).
    # TODO(synk): an in-kernel DMA row-gather (scalar-prefetched ids) would
    # remove this intermediate's HBM round-trip entirely.
    positions = jnp.arange(S, dtype=jnp.int32)
    x = (word_emb[bert_ids]
         + params["pos_emb"][positions][None, :, :]
         + params["type_emb"][None, :, :]).astype(jnp.float32)   # (B, S, indim)

    # Flatten (B, S) -> rows; LayerNorm/conv1d(k=1) are row-independent so
    # this (and zero-row padding) is exact.
    rows = B * S
    x = x.reshape(rows, indim)

    rt = min(row_tile, _round_up(rows, 8))
    rt = _round_up(rt, 8)
    rows_p = _round_up(rows, rt)
    if rows_p != rows:
        x = jnp.pad(x, ((0, rows_p - rows), (0, 0)))

    # bf16 I/O for the big activation + weight halves DMA bytes; LN stays f32.
    x_bf16 = x.astype(jnp.bfloat16)
    w_bf16 = params["conv_w"].astype(jnp.bfloat16)

    kernel = functools.partial(_fused_kernel, emb_eps=1e-5, ln_eps=1e-6)

    out = pl.pallas_call(
        kernel,
        out_shape=jax.ShapeDtypeStruct((rows_p, outdim), jnp.float32),
        grid_spec=pltpu.PrefetchScalarGridSpec(
            num_scalar_prefetch=0,
            grid=(rows_p // rt,),
            in_specs=[
                pl.BlockSpec((rt, indim), lambda r: (r, 0)),        # x rows
                pl.BlockSpec((1, indim), lambda r: (0, 0)),         # emb LN gamma
                pl.BlockSpec((1, indim), lambda r: (0, 0)),         # emb LN beta
                pl.BlockSpec((indim, outdim), lambda r: (0, 0)),    # conv W
                pl.BlockSpec((1, outdim), lambda r: (0, 0)),        # conv b
                pl.BlockSpec((1, outdim), lambda r: (0, 0)),        # q LN gamma
                pl.BlockSpec((1, outdim), lambda r: (0, 0)),        # q LN beta
            ],
            out_specs=pl.BlockSpec((rt, outdim), lambda r: (r, 0)),
        ),
        compiler_params=pltpu.CompilerParams(
            dimension_semantics=("parallel",)),
    )(
        x_bf16,
        params["emb_ln_g"][None, :], params["emb_ln_b"][None, :],
        w_bf16,
        params["conv_b"][None, :],
        params["q_ln_g"][None, :], params["q_ln_b"][None, :],
    )
    return out[:rows].reshape(B, S, outdim)


def init_params(key, vocab, max_pos, indim, outdim):
    ks = jax.random.split(key, 6)
    return {
        "word_emb": jax.random.normal(ks[0], (vocab, indim), jnp.float32) * 0.02,
        "pos_emb": jax.random.normal(ks[1], (max_pos, indim), jnp.float32) * 0.02,
        "type_emb": jax.random.normal(ks[2], (1, indim), jnp.float32) * 0.02,
        "emb_ln_g": jnp.ones((indim,), jnp.float32),
        "emb_ln_b": jnp.zeros((indim,), jnp.float32),
        "conv_w": jax.random.normal(ks[3], (indim, outdim), jnp.float32)
                  * (1.0 / jnp.sqrt(indim)),
        "conv_b": jax.random.normal(ks[4], (outdim,), jnp.float32) * 0.01,
        "q_ln_g": jnp.ones((outdim,), jnp.float32),
        "q_ln_b": jnp.zeros((outdim,), jnp.float32),
    }


def _reference(bert_ids, tmask, params):
    """Pure-JAX f32 reference of the same synthetic forward, for verification."""
    del tmask
    B, S = bert_ids.shape
    positions = jnp.arange(S, dtype=jnp.int32)
    x = (params["word_emb"][bert_ids]
         + params["pos_emb"][positions][None, :, :]
         + params["type_emb"][None, :, :]).astype(jnp.float32)

    def ln(v, g, b, eps):
        mu = jnp.mean(v, axis=-1, keepdims=True)
        var = jnp.mean((v - mu) ** 2, axis=-1, keepdims=True)
        return (v - mu) * jax.lax.rsqrt(var + eps) * g + b

    x = ln(x, params["emb_ln_g"], params["emb_ln_b"], 1e-5)
    y = jnp.einsum("bsi,io->bso", x, params["conv_w"]) + params["conv_b"]
    return ln(y, params["q_ln_g"], params["q_ln_b"], 1e-6)


if __name__ == "__main__":
    key = jax.random.PRNGKey(0)
    k_param, k_ids, k_ids2 = jax.random.split(key, 3)

    # Small test shapes; hidden dims are multiples of 128 so the output store
    # path is lane-dense (no masked vst).
    B, S = 2, 8
    indim, outdim = 128, 128
    vocab, max_pos = 100, 64

    params = init_params(k_param, vocab, max_pos, indim, outdim)
    bert_ids = jax.random.randint(k_ids, (B, S), 0, vocab, dtype=jnp.int32)
    tmask = jnp.ones((B, S), dtype=jnp.int32)

    out = roberta_embedding_forward(bert_ids, tmask, params)
    out = jax.block_until_ready(out)
    ref = _reference(bert_ids, tmask, params)
    assert out.shape == (B, S, outdim)
    # bf16 MXU operands / bf16 activation storage -> loosened tolerance vs
    # the pure-f32 reference (post-LN output is unit scale).
    assert jnp.allclose(out, ref, atol=2e-2, rtol=2e-2), "mismatch vs reference"

    # Second check: multi-step row-tiled grid + row padding path.
    B2, S2 = 3, 24                               # 72 rows -> padded to 80, grid=5
    bert_ids2 = jax.random.randint(k_ids2, (B2, S2), 0, vocab, dtype=jnp.int32)
    tmask2 = jnp.ones((B2, S2), dtype=jnp.int32)
    out2 = roberta_embedding_forward(bert_ids2, tmask2, params, row_tile=16)
    out2 = jax.block_until_ready(out2)
    ref2 = _reference(bert_ids2, tmask2, params)
    assert out2.shape == (B2, S2, outdim)
    assert jnp.allclose(out2, ref2, atol=2e-2, rtol=2e-2), "mismatch vs reference (tiled)"

    print("KERNEL_OK")
</pallas_src>

<mosaic_0001>
module attributes {stable_mosaic.version = 11 : i64} {
  func.func @_fused_kernel(%arg0: i32, %arg1: memref<16x128xbf16, #tpu.memory_space<vmem>>, %arg2: memref<1x128xf32, #tpu.memory_space<vmem>>, %arg3: memref<1x128xf32, #tpu.memory_space<vmem>>, %arg4: memref<128x128xbf16, #tpu.memory_space<vmem>>, %arg5: memref<1x128xf32, #tpu.memory_space<vmem>>, %arg6: memref<1x128xf32, #tpu.memory_space<vmem>>, %arg7: memref<1x128xf32, #tpu.memory_space<vmem>>, %arg8: memref<16x128xf32, #tpu.memory_space<vmem>>) attributes {dimension_semantics = [#tpu.dimension_semantics<parallel>], iteration_bounds = array<i64: 1>, scalar_prefetch = 0 : i64, scratch_operands = 0 : i64, tpu.core_type = #tpu.core_type<tc>, window_params = [{transform_indices = @transform_0, window_bounds = array<i64: 16, 128>}, {pipeline_mode = #tpu.pipeline_mode<synchronous>, transform_indices = @transform_1, window_bounds = array<i64: 1, 128>}, {pipeline_mode = #tpu.pipeline_mode<synchronous>, transform_indices = @transform_2, window_bounds = array<i64: 1, 128>}, {pipeline_mode = #tpu.pipeline_mode<synchronous>, transform_indices = @transform_3, window_bounds = array<i64: 128, 128>}, {pipeline_mode = #tpu.pipeline_mode<synchronous>, transform_indices = @transform_4, window_bounds = array<i64: 1, 128>}, {pipeline_mode = #tpu.pipeline_mode<synchronous>, transform_indices = @transform_5, window_bounds = array<i64: 1, 128>}, {pipeline_mode = #tpu.pipeline_mode<synchronous>, transform_indices = @transform_6, window_bounds = array<i64: 1, 128>}, {transform_indices = @transform_7, window_bounds = array<i64: 16, 128>}]} {
    %c0 = arith.constant 0 : index
    %c0_0 = arith.constant 0 : index
    %0 = vector.load %arg1[%c0, %c0_0] : memref<16x128xbf16, #tpu.memory_space<vmem>>, vector<16x128xbf16>
    %1 = arith.extf %0 : vector<16x128xbf16> to vector<16x128xf32>
    %cst = arith.constant dense<0.000000e+00> : vector<16xf32>
    %2 = vector.multi_reduction <add>, %1, %cst [1] : vector<16x128xf32> to vector<16xf32>
    %3 = vector.shape_cast %2 : vector<16xf32> to vector<16x1xf32>
    %cst_1 = arith.constant 1.280000e+02 : f32
    %4 = vector.broadcast %cst_1 : f32 to vector<16x1xf32>
    %5 = arith.divf %3, %4 : vector<16x1xf32>
    %6 = arith.mulf %1, %1 : vector<16x128xf32>
    %cst_2 = arith.constant dense<0.000000e+00> : vector<16xf32>
    %7 = vector.multi_reduction <add>, %6, %cst_2 [1] : vector<16x128xf32> to vector<16xf32>
    %8 = vector.shape_cast %7 : vector<16xf32> to vector<16x1xf32>
    %cst_3 = arith.constant 1.280000e+02 : f32
    %9 = vector.broadcast %cst_3 : f32 to vector<16x1xf32>
    %10 = arith.divf %8, %9 : vector<16x1xf32>
    %11 = arith.mulf %5, %5 : vector<16x1xf32>
    %12 = arith.subf %10, %11 : vector<16x1xf32>
    %cst_4 = arith.constant 0.000000e+00 : f32
    %13 = vector.broadcast %cst_4 : f32 to vector<16x1xf32>
    %14 = arith.maximumf %12, %13 : vector<16x1xf32>
    %15 = vector.broadcast %5 : vector<16x1xf32> to vector<16x128xf32>
    %16 = arith.subf %1, %15 : vector<16x128xf32>
    %cst_5 = arith.constant 9.99999974E-6 : f32
    %17 = vector.broadcast %cst_5 : f32 to vector<16x1xf32>
    %18 = arith.addf %14, %17 : vector<16x1xf32>
    %19 = math.rsqrt %18 : vector<16x1xf32>
    %20 = vector.broadcast %19 : vector<16x1xf32> to vector<16x128xf32>
    %21 = arith.mulf %16, %20 : vector<16x128xf32>
    %c0_6 = arith.constant 0 : index
    %c0_7 = arith.constant 0 : index
    %22 = vector.load %arg2[%c0_6, %c0_7] : memref<1x128xf32, #tpu.memory_space<vmem>>, vector<1x128xf32>
    %23 = vector.broadcast %22 : vector<1x128xf32> to vector<16x128xf32>
    %24 = arith.mulf %21, %23 : vector<16x128xf32>
    %c0_8 = arith.constant 0 : index
    %c0_9 = arith.constant 0 : index
    %25 = vector.load %arg3[%c0_8, %c0_9] : memref<1x128xf32, #tpu.memory_space<vmem>>, vector<1x128xf32>
    %26 = vector.broadcast %25 : vector<1x128xf32> to vector<16x128xf32>
    %27 = arith.addf %24, %26 : vector<16x128xf32>
    %28 = arith.truncf %27 : vector<16x128xf32> to vector<16x128xbf16>
    %c0_10 = arith.constant 0 : index
    %c0_11 = arith.constant 0 : index
    %29 = vector.load %arg4[%c0_10, %c0_11] : memref<128x128xbf16, #tpu.memory_space<vmem>>, vector<128x128xbf16>
    %cst_12 = arith.constant dense<0.000000e+00> : vector<16x128xf32>
    %30 = tpu.matmul %28, %29, %cst_12 {dimension_numbers = #tpu.dot_dimension_numbers<[1], [0], [0], [1], [0, 0, 1, 1], [], []>} : vector<16x128xbf16>, vector<128x128xbf16>, vector<16x128xf32> -> vector<16x128xf32>
    %c0_13 = arith.constant 0 : index
    %c0_14 = arith.constant 0 : index
    %31 = vector.load %arg5[%c0_13, %c0_14] : memref<1x128xf32, #tpu.memory_space<vmem>>, vector<1x128xf32>
    %32 = vector.broadcast %31 : vector<1x128xf32> to vector<16x128xf32>
    %33 = arith.addf %30, %32 : vector<16x128xf32>
    %cst_15 = arith.constant dense<0.000000e+00> : vector<16xf32>
    %34 = vector.multi_reduction <add>, %33, %cst_15 [1] : vector<16x128xf32> to vector<16xf32>
    %35 = vector.shape_cast %34 : vector<16xf32> to vector<16x1xf32>
    %cst_16 = arith.constant 1.280000e+02 : f32
    %36 = vector.broadcast %cst_16 : f32 to vector<16x1xf32>
    %37 = arith.divf %35, %36 : vector<16x1xf32>
    %38 = arith.mulf %33, %33 : vector<16x128xf32>
    %cst_17 = arith.constant dense<0.000000e+00> : vector<16xf32>
    %39 = vector.multi_reduction <add>, %38, %cst_17 [1] : vector<16x128xf32> to vector<16xf32>
    %40 = vector.shape_cast %39 : vector<16xf32> to vector<16x1xf32>
    %cst_18 = arith.constant 1.280000e+02 : f32
    %41 = vector.broadcast %cst_18 : f32 to vector<16x1xf32>
    %42 = arith.divf %40, %41 : vector<16x1xf32>
    %43 = arith.mulf %37, %37 : vector<16x1xf32>
    %44 = arith.subf %42, %43 : vector<16x1xf32>
    %cst_19 = arith.constant 0.000000e+00 : f32
    %45 = vector.broadcast %cst_19 : f32 to vector<16x1xf32>
    %46 = arith.maximumf %44, %45 : vector<16x1xf32>
    %47 = vector.broadcast %37 : vector<16x1xf32> to vector<16x128xf32>
    %48 = arith.subf %33, %47 : vector<16x128xf32>
    %cst_20 = arith.constant 9.99999997E-7 : f32
    %49 = vector.broadcast %cst_20 : f32 to vector<16x1xf32>
    %50 = arith.addf %46, %49 : vector<16x1xf32>
    %51 = math.rsqrt %50 : vector<16x1xf32>
    %52 = vector.broadcast %51 : vector<16x1xf32> to vector<16x128xf32>
    %53 = arith.mulf %48, %52 : vector<16x128xf32>
    %c0_21 = arith.constant 0 : index
    %c0_22 = arith.constant 0 : index
    %54 = vector.load %arg6[%c0_21, %c0_22] : memref<1x128xf32, #tpu.memory_space<vmem>>, vector<1x128xf32>
    %55 = vector.broadcast %54 : vector<1x128xf32> to vector<16x128xf32>
    %56 = arith.mulf %53, %55 : vector<16x128xf32>
    %c0_23 = arith.constant 0 : index
    %c0_24 = arith.constant 0 : index
    %57 = vector.load %arg7[%c0_23, %c0_24] : memref<1x128xf32, #tpu.memory_space<vmem>>, vector<1x128xf32>
    %58 = vector.broadcast %57 : vector<1x128xf32> to vector<16x128xf32>
    %59 = arith.addf %56, %58 : vector<16x128xf32>
    %c0_25 = arith.constant 0 : index
    %c0_26 = arith.constant 0 : index
    %60 = vector.load %arg8[%c0_25, %c0_26] : memref<16x128xf32, #tpu.memory_space<vmem>>, vector<16x128xf32>
    tpu.vector_store %arg8[%c0_25, %c0_26], %59 {strides = array<i32>} : memref<16x128xf32, #tpu.memory_space<vmem>>, vector<16x128xf32>,
    return
  }
  func.func @transform_0(%arg0: i32) -> (i32, i32) {
    %c0_i32 = arith.constant 0 : i32
    %c0_i32_0 = arith.constant 0 : i32
    return %arg0, %c0_i32 : i32, i32
  }
  func.func @transform_1(%arg0: i32) -> (i32, i32) {
    %c0_i32 = arith.constant 0 : i32
    %c0_i32_0 = arith.constant 0 : i32
    %c0_i32_1 = arith.constant 0 : i32
    return %c0_i32, %c0_i32_0 : i32, i32
  }
  func.func @transform_2(%arg0: i32) -> (i32, i32) {
    %c0_i32 = arith.constant 0 : i32
    %c0_i32_0 = arith.constant 0 : i32
    %c0_i32_1 = arith.constant 0 : i32
    return %c0_i32, %c0_i32_0 : i32, i32
  }
  func.func @transform_3(%arg0: i32) -> (i32, i32) {
    %c0_i32 = arith.constant 0 : i32
    %c0_i32_0 = arith.constant 0 : i32
    %c0_i32_1 = arith.constant 0 : i32
    return %c0_i32, %c0_i32_0 : i32, i32
  }
  func.func @transform_4(%arg0: i32) -> (i32, i32) {
    %c0_i32 = arith.constant 0 : i32
    %c0_i32_0 = arith.constant 0 : i32
    %c0_i32_1 = arith.constant 0 : i32
    return %c0_i32, %c0_i32_0 : i32, i32
  }
  func.func @transform_5(%arg0: i32) -> (i32, i32) {
    %c0_i32 = arith.constant 0 : i32
    %c0_i32_0 = arith.constant 0 : i32
    %c0_i32_1 = arith.constant 0 : i32
    return %c0_i32, %c0_i32_0 : i32, i32
  }
  func.func @transform_6(%arg0: i32) -> (i32, i32) {
    %c0_i32 = arith.constant 0 : i32
    %c0_i32_0 = arith.constant 0 : i32
    %c0_i32_1 = arith.constant 0 : i32
    return %c0_i32, %c0_i32_0 : i32, i32
  }
  func.func @transform_7(%arg0: i32) -> (i32, i32) {
    %c0_i32 = arith.constant 0 : i32
    %c0_i32_0 = arith.constant 0 : i32
    return %arg0, %c0_i32 : i32, i32
  }
}

</mosaic_0001>

<bundles_post_ra>
// kernel: tpu_custom_call.1
= control target key start
LH: loop header
LB: loop body
LE: loop exit
PB: predicated region body
PF: predicated region fallthrough
CT: control target
= control target key end

     0   :  { %12 = vsyncpa [#allocation3], 0  ;;  %s569_s0 = inlined_call_operand.hbm [shape: bf16[16,128], index: 0, kind: input, shape index: {}]   ;;  %s570_s1 = inlined_call_operand.hbm [shape: f32[1,128], index: 1, kind: input, shape index: {}]   ;;  %s571_s2 = inlined_call_operand.vmem [shape: f32[1,128], index: 2, kind: input, shape index: {}]   ;;  %s572_s3 = inlined_call_operand.hbm [shape: bf16[128,128], index: 3, kind: input, shape index: {}]   ;;  %s573_s4 = inlined_call_operand.vmem [shape: f32[1,128], index: 4, kind: input, shape index: {}]   ;;  %s574_s5 = inlined_call_operand.vmem [shape: f32[1,128], index: 5, kind: input, shape index: {}]   ;;  %s575_s6 = inlined_call_operand.vmem [shape: f32[1,128], index: 6, kind: input, shape index: {}]   ;;  %s576_s7 = inlined_call_operand.hbm [shape: f32[16,128], index: 7, kind: output, shape index: {}]  }
   0x1   :  { %13 = vsyncpa [#allocation6], 0  ;;  %s33_s26 = sshll.u32 %s570_s1, 4  ;;  %s34_s26 = int_to_ptr.hbm [resolvable:$true] %s33_s26 }
   0x2   :  { %14 = vsyncpa [#allocation4], 0  ;;  %s474_s27 = smov [#allocation5]   ;;  %s19_s8 = sshll.u32 %s569_s0, 4  ;;  %s20_s8 = int_to_ptr.hbm [resolvable:$true] %s19_s8 }
   0x3   :  { %s35_s28 = sshll.u32 %s474_s27, 4  ;;  %s475_s9 = smov [#allocation2]   ;;  %s36_s28 = int_to_ptr.vmem [resolvable:$true] %s35_s28 }
   0x4   :  { %38 = dma.hbm_to_vmem [thread:$0]  %s34_s26, 16, %s36_s28, [#allocation6]  }
   0x5   :  { %s21_s10 = sshll.u32 %s475_s9, 4  ;;  %s476_s11 = smov 64   ;;  %s22_s10 = int_to_ptr.vmem [resolvable:$true] %s21_s10 }
   0x6   :  { %s477_s12 = smov 4   ;;  %s45_s1 = sshll.u32 %s572_s3, 4  ;;  %s46_s1 = int_to_ptr.hbm [resolvable:$true] %s45_s1 }
   0x7   :  { %27 = dma.hbm_to_vmem [thread:$0]  %s20_s8, 128, %s22_s10, [#allocation3], %s476_s11, %s476_s11, %s477_s12  }
   0x8   :  { %s478_s15 = smov [#allocation7]  }
   0x9   :  { %s47_s16 = sshll.u32 %s478_s15, 4  ;;  %s48_s16 = int_to_ptr.vmem [resolvable:$true] %s47_s16 }
   0xa   :  { %53 = dma.hbm_to_vmem [thread:$0]  %s46_s1, 1024, %s48_s16, [#allocation6], %s476_s11, %s476_s11, %s477_s12  }
   0xb   :  { %468 = dma.done.wait [#allocation3], 128  }
   0xc   :  { %469 = vsyncadd [#allocation3], 4294967168 }
   0xd   :  { %470 = dma.done.wait [#allocation6], 1040  }
   0xe   :  { %471 = vsyncadd [#allocation6], 4294966256  ;;  %v345_v0 = vld [vmem:[#allocation2] sm:$0xff]   ;;  %v479_v5 = vmov 128.0   ;;  %v341_v11 = vld [vmem:[#allocation7 + $0x28] sm:$0xff]  ;;  %s290_s24 = sshll.u32 %s576_s7, 4  ;;  %s291_s24 = int_to_ptr.hbm [resolvable:$true] %s290_s24 }
   0xf   :  { %v532_v1 = vunpack.c.l.bf16 %v345_v0  ;;  %v537_v3 = vunpack.c.h.bf16 %v345_v0  ;;  %362 = vrcp.f32 %v479_v5  ;;  %v343_v7 = vld [vmem:[#allocation7 + $0x38] sm:$0xff]  ;;  %v342_v9 = vld [vmem:[#allocation7 + $0x30] sm:$0xff]  ;;  %v340_v13 = vld [vmem:[#allocation7 + $0x20] sm:$0xff]  ;;  %s482_s25 = smov 8  }
  0x10   :  { %210 = vmatpush.bf16.msra.mxu0 %v343_v7  ;;  %v339_v15 = vld [vmem:[#allocation7 + $0x18] sm:$0xff]  ;;  %v338_v19 = vld [vmem:[#allocation7 + $0x10] sm:$0xff]  ;;  %v337_v23 = vld [vmem:[#allocation7 + $0x8] sm:$0xff] }
  0x11   :  { %76 = vadd.xlane.f32.xlu0 %v532_v1  ;;  %v89_v2 = vmul.f32 %v532_v1, %v532_v1  ;;  %v90_v4 = vmul.f32 %v537_v3, %v537_v3  ;;  %v336_v26 = vld [vmem:[#allocation7] sm:$0xff]  ;;  %v357_v50 = vld [vmem:[#allocation5] ss:$0 sm:$0xff]  ;;  %v358_v56 = vld [vmem:[%s571_s2] ss:$0 sm:$0xff] }
  0x12   :  { %v359_v61 = vld [vmem:[%s573_s4] ss:$0 sm:$0xff] }
  0x13   :  { %91 = vadd.xlane.f32.xlu1 %v89_v2 }
  0x14   :  { %211 = vmatpush.bf16.msra.mxu0 %v342_v9 }
  0x15   :  { %v363_v6 = vpop.eup %362 }
  0x16   :  { %v81_v8 = vmul.f32 128.0, %v363_v6  ;;  %vm85_vm0 = vweird.f32 %v363_v6 }
  0x18   :  { %v82_v10 = vsub.f32 1.0, %v81_v8  ;;  %212 = vmatpush.bf16.msra.mxu0 %v341_v11 }
  0x19   :  { %78 = vadd.xlane.f32.xlu0 %v537_v3 }
  0x1a   :  { %v83_v12 = vmul.f32 %v363_v6, %v82_v10 }
  0x1b   :  { %93 = vadd.xlane.f32.xlu1 %v90_v4 }
  0x1c   :  { %v84_v14 = vadd.f32 %v363_v6, %v83_v12  ;;  %213 = vmatpush.bf16.msra.mxu0 %v340_v13 }
  0x1e   :  { %v542_v16 = vsel %vm85_vm0, %v363_v6, %v84_v14 }
  0x20   :  { %214 = vmatpush.bf16.msra.mxu0 %v339_v15 }
  0x24   :  { %215 = vmatpush.bf16.msra.mxu0 %v338_v19 }
  0x28   :  { %216 = vmatpush.bf16.msra.mxu0 %v337_v23 }
  0x2c   :  { %217 = vmatpush.bf16.msra.mxu0 %v336_v26 }
  0x84   :  { %v77_v17 = vpop.xlane.xlu0 %76 }
  0x85   :  { %v87_v18 = vmul.f32 %v542_v16, %v77_v17 }
  0x86   :  { %v92_v20 = vpop.xlane.xlu1 %91 }
  0x87   :  { %v97_v21 = vmul.f32 %v87_v18, %v87_v18  ;;  %v95_v22 = vmul.f32 %v92_v20, %v542_v16  ;;  %v103_v47 = vsub.f32 %v532_v1, %v87_v18 }
  0x89   :  { %v99_v24 = vsub.f32 %v95_v22, %v97_v21 }
  0x8b   :  { %v101_v25 = vmax.f32 %v99_v24, 0.0 }
  0x8c   :  { %v79_v27 = vpop.xlane.xlu0 %78 }
  0x8d   :  { %v105_v28 = vadd.f32 1e-05, %v101_v25  ;;  %v88_v29 = vmul.f32 %v542_v16, %v79_v27 }
  0x8e   :  { %v94_v30 = vpop.xlane.xlu1 %93 }
  0x8f   :  { %364 = vrsqrt.f32 %v105_v28  ;;  %v98_v31 = vmul.f32 %v88_v29, %v88_v29  ;;  %v96_v32 = vmul.f32 %v94_v30, %v542_v16  ;;  %vm113_vm2 = vweird.f32 %v105_v28 }
  0x90   :  { %v104_v52 = vsub.f32 %v537_v3, %v88_v29  ;;  %v360_v29 = vld [vmem:[%s574_s5] ss:$0 sm:$0xff]  ;;  %s480_s5 = smov [#allocation8]  }
  0x91   :  { %v100_v33 = vsub.f32 %v96_v32, %v98_v31  ;;  %s288_s21 = sshll.u32 %s480_s5, 4  ;;  %s289_s21 = int_to_ptr.vmem [resolvable:$true] %s288_s21 }
  0x93   :  { %v102_v34 = vmax.f32 %v100_v33, 0.0  ;;  %v361_v33 = vld [vmem:[%s575_s6] ss:$0 sm:$0xff]  ;;  %s481_s6 = smov 128  }
  0x95   :  { %v365_v35 = vpop.eup %364  ;;  %v106_v37 = vadd.f32 1e-05, %v102_v34 }
  0x96   :  { %v108_v36 = vmul.f32 %v365_v35, %v105_v28  ;;  %vm114_vm1 = vweird.f32 %v365_v35 }
  0x97   :  { %366 = vrsqrt.f32 %v106_v37  ;;  %vm115_vm3 = vmor %vm113_vm2, %vm114_vm1  ;;  %vm123_vm5 = vweird.f32 %v106_v37 }
  0x98   :  { %v109_v38 = vmul.f32 %v365_v35, %v108_v36 }
  0x9a   :  { %v110_v39 = vmul.f32 0.5, %v109_v38 }
  0x9c   :  { %v111_v40 = vsub.f32 1.5, %v110_v39 }
  0x9d   :  { %v367_v41 = vpop.eup %366 }
  0x9e   :  { %v118_v42 = vmul.f32 %v367_v41, %v106_v37  ;;  %v112_v43 = vmul.f32 %v365_v35, %v111_v40  ;;  %vm124_vm4 = vweird.f32 %v367_v41 }
  0x9f   :  { %vm125_vm6 = vmor %vm123_vm5, %vm124_vm4 }
  0xa0   :  { %v119_v44 = vmul.f32 %v367_v41, %v118_v42  ;;  %v116_v46 = vsel %vm115_vm3, %v365_v35, %v112_v43 }
  0xa1   :  { %v127_v49 = vmul.f32 %v116_v46, %v103_v47 }
  0xa2   :  { %v120_v45 = vmul.f32 0.5, %v119_v44 }
  0xa3   :  { %v133_v55 = vmul.f32 %v357_v50, %v127_v49 }
  0xa4   :  { %v121_v48 = vsub.f32 1.5, %v120_v45 }
  0xa5   :  { %v139_v58 = vadd.f32 %v358_v56, %v133_v55 }
  0xa6   :  { %v122_v51 = vmul.f32 %v367_v41, %v121_v48 }
  0xa8   :  { %v126_v53 = vsel %vm125_vm6, %v367_v41, %v122_v51 }
  0xa9   :  { %v128_v54 = vmul.f32 %v126_v53, %v104_v52 }
  0xab   :  { %v134_v57 = vmul.f32 %v357_v50, %v128_v54 }
  0xad   :  { %v140_v59 = vadd.f32 %v358_v56, %v134_v57 }
  0xaf   :  { %v141_v60 = vpack.c.bf16 %v140_v59, %v139_v58 }
  0xb1   :  { %218 = vmatmul.bf16.vlgmr.msra.gmra.mxu0 %v141_v60 }
 0x12e   :  { %v219_v62 = vpop.f32.mrf.mxu0 }
 0x12f   :  { %v220_v63 = vadd.f32 %v359_v61, %v219_v62 }
 0x131   :  { %224 = vadd.xlane.f32.xlu2 %v220_v63  ;;  %v230_v0 = vmul.f32 %v220_v63, %v220_v63 }
 0x133   :  { %232 = vadd.xlane.f32.xlu0 %v230_v0 }
 0x136   :  { %v221_v1 = vpop.f32.mrf.mxu0 }
 0x137   :  { %v222_v2 = vadd.f32 %v359_v61, %v221_v1 }
 0x139   :  { %226 = vadd.xlane.f32.xlu2 %v222_v2  ;;  %v231_v3 = vmul.f32 %v222_v2, %v222_v2 }
 0x13b   :  { %234 = vadd.xlane.f32.xlu1 %v231_v3 }
 0x1a4   :  { %v225_v4 = vpop.xlane.xlu2 %224 }
 0x1a5   :  { %v228_v5 = vmul.f32 %v225_v4, %v542_v16 }
 0x1a6   :  { %v233_v6 = vpop.xlane.xlu0 %232 }
 0x1a7   :  { %v238_v7 = vmul.f32 %v228_v5, %v228_v5  ;;  %v236_v8 = vmul.f32 %v233_v6, %v542_v16  ;;  %v244_v28 = vsub.f32 %v220_v63, %v228_v5 }
 0x1a9   :  { %v240_v9 = vsub.f32 %v236_v8, %v238_v7 }
 0x1ab   :  { %v242_v10 = vmax.f32 %v240_v9, 0.0 }
 0x1ac   :  { %v227_v11 = vpop.xlane.xlu2 %226 }
 0x1ad   :  { %v246_v12 = vadd.f32 1e-06, %v242_v10  ;;  %v229_v13 = vmul.f32 %v227_v11, %v542_v16 }
 0x1ae   :  { %v235_v14 = vpop.xlane.xlu1 %234 }
 0x1af   :  { %368 = vrsqrt.f32 %v246_v12  ;;  %v239_v15 = vmul.f32 %v229_v13, %v229_v13  ;;  %v237_v17 = vmul.f32 %v235_v14, %v542_v16  ;;  %vm254_vm8 = vweird.f32 %v246_v12 }
 0x1b0   :  { %v245_v39 = vsub.f32 %v222_v2, %v229_v13 }
 0x1b1   :  { %v241_v18 = vsub.f32 %v237_v17, %v239_v15 }
 0x1b3   :  { %v243_v19 = vmax.f32 %v241_v18, 0.0 }
 0x1b5   :  { %v369_v20 = vpop.eup %368  ;;  %v247_v22 = vadd.f32 1e-06, %v243_v19 }
 0x1b6   :  { %v249_v21 = vmul.f32 %v369_v20, %v246_v12  ;;  %vm255_vm7 = vweird.f32 %v369_v20 }
 0x1b7   :  { %370 = vrsqrt.f32 %v247_v22  ;;  %vm256_vm9 = vmor %vm254_vm8, %vm255_vm7  ;;  %vm264_vm11 = vweird.f32 %v247_v22 }
 0x1b8   :  { %v250_v23 = vmul.f32 %v369_v20, %v249_v21 }
 0x1ba   :  { %v251_v24 = vmul.f32 0.5, %v250_v23 }
 0x1bc   :  { %v252_v25 = vsub.f32 1.5, %v251_v24 }
 0x1bd   :  { %v371_v26 = vpop.eup %370 }
 0x1be   :  { %v253_v27 = vmul.f32 %v369_v20, %v252_v25  ;;  %v259_v16 = vmul.f32 %v371_v26, %v247_v22  ;;  %vm265_vm10 = vweird.f32 %v371_v26 }
 0x1bf   :  { %vm266_vm12 = vmor %vm264_vm11, %vm265_vm10 }
 0x1c0   :  { %v257_v30 = vsel %vm256_vm9, %v369_v20, %v253_v27  ;;  %v260_v32 = vmul.f32 %v371_v26, %v259_v16 }
 0x1c1   :  { %v268_v31 = vmul.f32 %v257_v30, %v244_v28 }
 0x1c2   :  { %v261_v35 = vmul.f32 0.5, %v260_v32 }
 0x1c3   :  { %v274_v34 = vmul.f32 %v360_v29, %v268_v31 }
 0x1c4   :  { %v262_v36 = vsub.f32 1.5, %v261_v35 }
 0x1c5   :  { %v280_v37 = vadd.f32 %v361_v33, %v274_v34 }
 0x1c6   :  { %v263_v38 = vmul.f32 %v371_v26, %v262_v36 }
 0x1c7   :  { %282 = vst [vmem:[#allocation8] sm:$0xff] %v280_v37 }
 0x1c8   :  { %v267_v40 = vsel %vm266_vm12, %v371_v26, %v263_v38 }
 0x1c9   :  { %v269_v41 = vmul.f32 %v267_v40, %v245_v39 }
 0x1cb   :  { %v275_v42 = vmul.f32 %v360_v29, %v269_v41 }
 0x1cd   :  { %v281_v43 = vadd.f32 %v361_v33, %v275_v42 }
 0x1cf   :  { %283 = vst [vmem:[#allocation8 + $0x8] sm:$0xff] %v281_v43 }
 0x1d0   :  { %296 = dma.vmem_to_hbm [thread:$0]  %s289_s21, 256, %s291_s24, [#allocation4], %s481_s6, %s481_s6, %s482_s25  }
 0x1d1   :  { %472 = dma.done.wait [#allocation4], 256  }
 0x1d2   :  { %473 = vsyncadd [#allocation4], 4294967040 }
 0x1d3   :  { %301 = vsyncpa [#allocation3], 1 }
 0x1d4   :  { %302 = vsyncpa [#allocation6], 1 }
 0x1d5   :  { %303 = vsyncpa [#allocation4], 1 }

</bundles_post_ra>
